<compile_context>
chip_gen: v7x
topology: tpu7x:2x2x1
jax: 0.10.0
libtpu: 0.0.40
codegen_flags: <defaults>
</compile_context>

<pallas_src>
import math
import jax
import jax.numpy as jnp
from jax import lax
from jax.experimental import pallas as pl
from jax.experimental.pallas import tpu as pltpu

LANE = 128      # lane width: pad hidden feature dim to multiples of this
SUB = 16        # bf16 sublane pack: small-batch tiles rounded to multiples of this
OUT_SUB = 8     # f32 sublane tile: transposed-output feature dim padded to this


def _round_up(n, m):
    return ((n + m - 1) // m) * m


def qnetwork_kernel(x_ref, w1_ref, b1_ref, w2_ref, b2_ref, w3t_ref, b3t_ref,
                    o_ref, h_ref):
    # Layer 1: Linear + ReLU.  x arrives in its native dtype; cast to bf16
    # in-kernel right before the MXU (f32 accumulation).
    x_bf = x_ref[...].astype(jnp.bfloat16)
    h1 = jnp.dot(x_bf, w1_ref[...],
                 preferred_element_type=jnp.float32) + b1_ref[...]
    h_ref[...] = jnp.maximum(h1, 0.0).astype(h_ref.dtype)   # stage layer-1 act in bf16 VMEM

    # Layer 2: Linear + ReLU.  Keep the activation as a local value (no second
    # VMEM round-trip) and feed it straight into the output matmul.
    h2 = jnp.dot(h_ref[...], w2_ref[...],
                 preferred_element_type=jnp.float32) + b2_ref[...]
    h2_act = jnp.maximum(h2, 0.0).astype(jnp.bfloat16)

    # Output layer, emitted transposed: o^T = w3^T @ h2^T -> (out_pad8, TM).
    # Batch sits on the lane axis, so only 8 f32 sublanes are written back per
    # tile instead of a 128-lane padded row per batch element.
    ot = lax.dot_general(w3t_ref[...], h2_act,
                         dimension_numbers=(((1,), (1,)), ((), ())),
                         preferred_element_type=jnp.float32)
    o_ref[...] = (ot + b3t_ref[...]).astype(o_ref.dtype)


def _pad2(a, rows, cols):
    r, c = a.shape
    return jnp.pad(a, ((0, rows - r), (0, cols - c)))


def pack_params(params):
    """Pad feature dims, cast weights to bf16 (biases f32).
    The final layer is stored transposed so the kernel can emit o^T directly."""
    in_dim, hidden = params["w1"].shape
    out_dim = params["w3"].shape[1]
    h_pad = _round_up(hidden, LANE)
    o_sub = _round_up(out_dim, OUT_SUB)
    packed = {
        "w1": _pad2(params["w1"], in_dim, h_pad).astype(jnp.bfloat16),
        "b1": _pad2(params["b1"], 1, h_pad).astype(jnp.float32),
        "w2": _pad2(params["w2"], h_pad, h_pad).astype(jnp.bfloat16),
        "b2": _pad2(params["b2"], 1, h_pad).astype(jnp.float32),
        # final layer transposed: (out_pad8, h_pad) / (out_pad8, 1)
        "w3t": _pad2(params["w3"].T, o_sub, h_pad).astype(jnp.bfloat16),
        "b3t": _pad2(params["b3"].T, o_sub, 1).astype(jnp.float32),
        "in_dim": in_dim, "hidden_pad": h_pad,
        "out_dim": out_dim, "out_sub": o_sub,
    }
    return packed


def qnetwork_forward(x, packed, tm=2048):
    """x: (B, input_dim) f32/bf16.  packed: output of pack_params.  Returns (B, output_dim) f32."""
    B, in_dim = x.shape
    assert in_dim == packed["in_dim"]
    h_pad = packed["hidden_pad"]
    o_sub = packed["out_sub"]
    out_dim = packed["out_dim"]

    # ---- batch tiling ----------------------------------------------------
    # Transposed output puts the batch on the lane axis, so any multi-tile TM
    # must be a multiple of 128.  Tiny batches use one full-array tile.  Large
    # batches aim for >= 2 grid steps so the "parallel" axis can shard across
    # v7x's two TensorCores.  Working set at TM=2048 is only a few MiB, well
    # inside every generation's default scoped-VMEM limit.
    B128 = _round_up(B, LANE)
    if B128 <= LANE:
        TM = _round_up(B, SUB)
        B_pad = TM
    else:
        tm = _round_up(max(tm, LANE), LANE)
        half = max(LANE, (B128 // 2) // LANE * LANE)   # >= 2 tiles when possible
        TM = min(tm, half)
        B_pad = _round_up(B, TM)
    grid = (B_pad // TM,)

    # Only pad when actually needed; keep x in its native dtype (cast happens
    # in-kernel, avoiding a separate un-hidden wrapper pass over x).
    x_in = x if B_pad == B else jnp.pad(x, ((0, B_pad - B), (0, 0)))

    resident = lambda shape: pl.BlockSpec(shape, lambda i: (0, 0))

    out_t = pl.pallas_call(
        qnetwork_kernel,
        out_shape=jax.ShapeDtypeStruct((o_sub, B_pad), jnp.float32),
        grid_spec=pltpu.PrefetchScalarGridSpec(
            num_scalar_prefetch=0,
            grid=grid,
            in_specs=[
                pl.BlockSpec((TM, in_dim), lambda i: (i, 0)),   # x tile streams
                resident((in_dim, h_pad)),                      # w1 (VMEM-resident)
                resident((1, h_pad)),                           # b1
                resident((h_pad, h_pad)),                       # w2
                resident((1, h_pad)),                           # b2
                resident((o_sub, h_pad)),                       # w3^T
                resident((o_sub, 1)),                           # b3^T
            ],
            out_specs=pl.BlockSpec((o_sub, TM), lambda i: (0, i)),  # o^T tile (batch on lanes)
            scratch_shapes=[pltpu.VMEM((TM, h_pad), jnp.bfloat16)],  # staged layer-1 act.
        ),
        compiler_params=pltpu.CompilerParams(
            dimension_semantics=("parallel",),   # shard batch tiles across TCs (v7x)
        ),
    )(x_in, packed["w1"], packed["b1"], packed["w2"], packed["b2"],
      packed["w3t"], packed["b3t"])

    # (out_dim, B) -> (B, out_dim): tiny slice + transpose in the wrapper.
    return out_t[:out_dim, :B].T


def init_qnetwork_params(key, input_dim, output_dim, hidden_dim=64):
    """Deterministic init mimicking PyTorch nn.Linear default (uniform +/- 1/sqrt(fan_in)).
    Weights stored as (in_features, out_features), i.e. transposed vs PyTorch."""
    ks = jax.random.split(key, 6)

    def linear(kw, kb, fan_in, fan_out):
        bound = 1.0 / math.sqrt(fan_in)
        w = jax.random.uniform(kw, (fan_in, fan_out), jnp.float32, -bound, bound)
        b = jax.random.uniform(kb, (1, fan_out), jnp.float32, -bound, bound)
        return w, b

    w1, b1 = linear(ks[0], ks[1], input_dim, hidden_dim)
    w2, b2 = linear(ks[2], ks[3], hidden_dim, hidden_dim)
    w3, b3 = linear(ks[4], ks[5], hidden_dim, output_dim)
    return {"w1": w1, "b1": b1, "w2": w2, "b2": b2, "w3": w3, "b3": b3}


def qnetwork_reference(x, p):
    """Reference matching the kernel's numerics: bf16 matmul inputs, f32 accumulate."""
    q = lambda a: a.astype(jnp.bfloat16).astype(jnp.float32)
    h = jnp.maximum(q(x) @ q(p["w1"]) + p["b1"], 0.0)
    h = jnp.maximum(q(h) @ q(p["w2"]) + p["b2"], 0.0)
    return q(h) @ q(p["w3"]) + p["b3"]


if __name__ == "__main__":
    key = jax.random.PRNGKey(0)
    k_param, k_x = jax.random.split(key)

    batch, input_dim, output_dim, hidden_dim = 8, 16, 4, 64
    params = init_qnetwork_params(k_param, input_dim, output_dim, hidden_dim)
    x = jax.random.normal(k_x, (batch, input_dim), jnp.float32)

    packed = pack_params(params)
    out = qnetwork_forward(x, packed)
    out = jax.block_until_ready(out)

    ref = qnetwork_reference(x, params)
    assert out.shape == (batch, output_dim)
    assert jnp.allclose(out, ref, atol=1e-4, rtol=1e-4), \
        f"max abs err {jnp.max(jnp.abs(out - ref))}"

    # sanity vs full-f32 reference (loose tol: bf16 weight/input quantization)
    ref_f32 = jnp.maximum(x @ params["w1"] + params["b1"], 0.0)
    ref_f32 = jnp.maximum(ref_f32 @ params["w2"] + params["b2"], 0.0)
    ref_f32 = ref_f32 @ params["w3"] + params["b3"]
    assert jnp.allclose(out, ref_f32, atol=5e-2, rtol=5e-2)

    print("KERNEL_OK")
</pallas_src>

<mosaic_0001>
module attributes {stable_mosaic.version = 11 : i64} {
  func.func @qnetwork_kernel(%arg0: i32, %arg1: memref<16x16xf32, #tpu.memory_space<vmem>>, %arg2: memref<16x128xbf16, #tpu.memory_space<vmem>>, %arg3: memref<1x128xf32, #tpu.memory_space<vmem>>, %arg4: memref<128x128xbf16, #tpu.memory_space<vmem>>, %arg5: memref<1x128xf32, #tpu.memory_space<vmem>>, %arg6: memref<8x128xbf16, #tpu.memory_space<vmem>>, %arg7: memref<8x1xf32, #tpu.memory_space<vmem>>, %arg8: memref<8x16xf32, #tpu.memory_space<vmem>>, %arg9: memref<16x128xbf16, #tpu.memory_space<vmem>>) attributes {dimension_semantics = [#tpu.dimension_semantics<parallel>], iteration_bounds = array<i64: 1>, scalar_prefetch = 0 : i64, scratch_operands = 1 : i64, tpu.core_type = #tpu.core_type<tc>, window_params = [{transform_indices = @transform_0, window_bounds = array<i64: 16, 16>}, {pipeline_mode = #tpu.pipeline_mode<synchronous>, transform_indices = @transform_1, window_bounds = array<i64: 16, 128>}, {pipeline_mode = #tpu.pipeline_mode<synchronous>, transform_indices = @transform_2, window_bounds = array<i64: 1, 128>}, {pipeline_mode = #tpu.pipeline_mode<synchronous>, transform_indices = @transform_3, window_bounds = array<i64: 128, 128>}, {pipeline_mode = #tpu.pipeline_mode<synchronous>, transform_indices = @transform_4, window_bounds = array<i64: 1, 128>}, {pipeline_mode = #tpu.pipeline_mode<synchronous>, transform_indices = @transform_5, window_bounds = array<i64: 8, 128>}, {pipeline_mode = #tpu.pipeline_mode<synchronous>, transform_indices = @transform_6, window_bounds = array<i64: 8, 1>}, {transform_indices = @transform_7, window_bounds = array<i64: 8, 16>}]} {
    %c0 = arith.constant 0 : index
    %c0_0 = arith.constant 0 : index
    %0 = vector.load %arg1[%c0, %c0_0] : memref<16x16xf32, #tpu.memory_space<vmem>>, vector<16x16xf32>
    %1 = arith.truncf %0 : vector<16x16xf32> to vector<16x16xbf16>
    %c0_1 = arith.constant 0 : index
    %c0_2 = arith.constant 0 : index
    %2 = vector.load %arg2[%c0_1, %c0_2] : memref<16x128xbf16, #tpu.memory_space<vmem>>, vector<16x128xbf16>
    %cst = arith.constant dense<0.000000e+00> : vector<16x128xf32>
    %3 = tpu.matmul %1, %2, %cst {dimension_numbers = #tpu.dot_dimension_numbers<[1], [0], [0], [1], [0, 0, 1, 1], [], []>} : vector<16x16xbf16>, vector<16x128xbf16>, vector<16x128xf32> -> vector<16x128xf32>
    %c0_3 = arith.constant 0 : index
    %c0_4 = arith.constant 0 : index
    %4 = vector.load %arg3[%c0_3, %c0_4] : memref<1x128xf32, #tpu.memory_space<vmem>>, vector<1x128xf32>
    %5 = vector.broadcast %4 : vector<1x128xf32> to vector<16x128xf32>
    %6 = arith.addf %3, %5 : vector<16x128xf32>
    %cst_5 = arith.constant 0.000000e+00 : f32
    %7 = vector.broadcast %cst_5 : f32 to vector<16x128xf32>
    %8 = arith.maximumf %6, %7 : vector<16x128xf32>
    %9 = arith.truncf %8 : vector<16x128xf32> to vector<16x128xbf16>
    %c0_6 = arith.constant 0 : index
    %c0_7 = arith.constant 0 : index
    %10 = vector.load %arg9[%c0_6, %c0_7] : memref<16x128xbf16, #tpu.memory_space<vmem>>, vector<16x128xbf16>
    tpu.vector_store %arg9[%c0_6, %c0_7], %9 {strides = array<i32>} : memref<16x128xbf16, #tpu.memory_space<vmem>>, vector<16x128xbf16>,
    %c0_8 = arith.constant 0 : index
    %c0_9 = arith.constant 0 : index
    %11 = vector.load %arg9[%c0_8, %c0_9] : memref<16x128xbf16, #tpu.memory_space<vmem>>, vector<16x128xbf16>
    %c0_10 = arith.constant 0 : index
    %c0_11 = arith.constant 0 : index
    %12 = vector.load %arg4[%c0_10, %c0_11] : memref<128x128xbf16, #tpu.memory_space<vmem>>, vector<128x128xbf16>
    %cst_12 = arith.constant dense<0.000000e+00> : vector<16x128xf32>
    %13 = tpu.matmul %11, %12, %cst_12 {dimension_numbers = #tpu.dot_dimension_numbers<[1], [0], [0], [1], [0, 0, 1, 1], [], []>} : vector<16x128xbf16>, vector<128x128xbf16>, vector<16x128xf32> -> vector<16x128xf32>
    %c0_13 = arith.constant 0 : index
    %c0_14 = arith.constant 0 : index
    %14 = vector.load %arg5[%c0_13, %c0_14] : memref<1x128xf32, #tpu.memory_space<vmem>>, vector<1x128xf32>
    %15 = vector.broadcast %14 : vector<1x128xf32> to vector<16x128xf32>
    %16 = arith.addf %13, %15 : vector<16x128xf32>
    %cst_15 = arith.constant 0.000000e+00 : f32
    %17 = vector.broadcast %cst_15 : f32 to vector<16x128xf32>
    %18 = arith.maximumf %16, %17 : vector<16x128xf32>
    %19 = arith.truncf %18 : vector<16x128xf32> to vector<16x128xbf16>
    %c0_16 = arith.constant 0 : index
    %c0_17 = arith.constant 0 : index
    %20 = vector.load %arg6[%c0_16, %c0_17] : memref<8x128xbf16, #tpu.memory_space<vmem>>, vector<8x128xbf16>
    %cst_18 = arith.constant dense<0.000000e+00> : vector<8x16xf32>
    %21 = tpu.matmul %20, %19, %cst_18 {dimension_numbers = #tpu.dot_dimension_numbers<[1], [1], [0], [0], [0, 0, 1, 0], [], []>} : vector<8x128xbf16>, vector<16x128xbf16>, vector<8x16xf32> -> vector<8x16xf32>
    %c0_19 = arith.constant 0 : index
    %c0_20 = arith.constant 0 : index
    %22 = vector.load %arg7[%c0_19, %c0_20] : memref<8x1xf32, #tpu.memory_space<vmem>>, vector<8x1xf32>
    %23 = vector.broadcast %22 : vector<8x1xf32> to vector<8x16xf32>
    %24 = arith.addf %21, %23 : vector<8x16xf32>
    %c0_21 = arith.constant 0 : index
    %c0_22 = arith.constant 0 : index
    %25 = vector.load %arg8[%c0_21, %c0_22] : memref<8x16xf32, #tpu.memory_space<vmem>>, vector<8x16xf32>
    tpu.vector_store %arg8[%c0_21, %c0_22], %24 {strides = array<i32>} : memref<8x16xf32, #tpu.memory_space<vmem>>, vector<8x16xf32>,
    return
  }
  func.func @transform_0(%arg0: i32) -> (i32, i32) {
    %c0_i32 = arith.constant 0 : i32
    %c0_i32_0 = arith.constant 0 : i32
    return %arg0, %c0_i32 : i32, i32
  }
  func.func @transform_1(%arg0: i32) -> (i32, i32) {
    %c0_i32 = arith.constant 0 : i32
    %c0_i32_0 = arith.constant 0 : i32
    %c0_i32_1 = arith.constant 0 : i32
    return %c0_i32, %c0_i32_0 : i32, i32
  }
  func.func @transform_2(%arg0: i32) -> (i32, i32) {
    %c0_i32 = arith.constant 0 : i32
    %c0_i32_0 = arith.constant 0 : i32
    %c0_i32_1 = arith.constant 0 : i32
    return %c0_i32, %c0_i32_0 : i32, i32
  }
  func.func @transform_3(%arg0: i32) -> (i32, i32) {
    %c0_i32 = arith.constant 0 : i32
    %c0_i32_0 = arith.constant 0 : i32
    %c0_i32_1 = arith.constant 0 : i32
    return %c0_i32, %c0_i32_0 : i32, i32
  }
  func.func @transform_4(%arg0: i32) -> (i32, i32) {
    %c0_i32 = arith.constant 0 : i32
    %c0_i32_0 = arith.constant 0 : i32
    %c0_i32_1 = arith.constant 0 : i32
    return %c0_i32, %c0_i32_0 : i32, i32
  }
  func.func @transform_5(%arg0: i32) -> (i32, i32) {
    %c0_i32 = arith.constant 0 : i32
    %c0_i32_0 = arith.constant 0 : i32
    %c0_i32_1 = arith.constant 0 : i32
    return %c0_i32, %c0_i32_0 : i32, i32
  }
  func.func @transform_6(%arg0: i32) -> (i32, i32) {
    %c0_i32 = arith.constant 0 : i32
    %c0_i32_0 = arith.constant 0 : i32
    %c0_i32_1 = arith.constant 0 : i32
    return %c0_i32, %c0_i32_0 : i32, i32
  }
  func.func @transform_7(%arg0: i32) -> (i32, i32) {
    %c0_i32 = arith.constant 0 : i32
    %c0_i32_0 = arith.constant 0 : i32
    return %c0_i32, %arg0 : i32, i32
  }
}

</mosaic_0001>

<bundles_post_ra>
// kernel: tpu_custom_call.1
= control target key start
LH: loop header
LB: loop body
LE: loop exit
PB: predicated region body
PF: predicated region fallthrough
CT: control target
= control target key end

     0   :  { %12 = vsyncpa [#allocation4], 0  ;;  %s558_s0 = inlined_call_operand.hbm [shape: f32[16,16], index: 0, kind: input, shape index: {}]   ;;  %s559_s1 = inlined_call_operand.vmem [shape: bf16[16,128], index: 1, kind: input, shape index: {}]   ;;  %s560_s2 = inlined_call_operand.vmem [shape: f32[1,128], index: 2, kind: input, shape index: {}]   ;;  %s561_s3 = inlined_call_operand.hbm [shape: bf16[128,128], index: 3, kind: input, shape index: {}]   ;;  %s562_s4 = inlined_call_operand.vmem [shape: f32[1,128], index: 4, kind: input, shape index: {}]   ;;  %s563_s5 = inlined_call_operand.vmem [shape: bf16[8,128], index: 5, kind: input, shape index: {}]   ;;  %s564_s6 = inlined_call_operand.vmem [shape: f32[8,1], index: 6, kind: input, shape index: {}]   ;;  %s565_s7 = inlined_call_operand.hbm [shape: f32[8,16], index: 7, kind: output, shape index: {}]  }
   0x1   :  { %13 = vsyncpa [#allocation7], 0 }
   0x2   :  { %14 = vsyncpa [#allocation5], 0  ;;  %s452_s24 = smov [#allocation3]   ;;  %s380_s28 = scalar_lea.hbm %s558_s0, 256 }
   0x3   :  { %s20_s25 = sshll.u32 %s452_s24, 4  ;;  %p381_p0 = scmp.ne.s32.totalorder %s558_s0, %s380_s28  ;;  %s21_s25 = int_to_ptr.vmem [resolvable:$true] %s20_s25 }
   0x4   :  { %p384_p1 = scmp.lt.u32.totalorder %s380_s28, %s558_s0 }
   0x6   :  { %p386_p2 = pnand %p384_p1, %p381_p0 }
   0x8   :  { %389 = shalt.err (!%p386_p2)
}
   0x9   :  { %s390_s10 = scalar_lea.vmem %s21_s25, 256  ;;  %p395_p4 = scmp.lt.s32.totalorder %s21_s25, %s21_s25 }
   0xa   :  { %p391_p3 = scmp.ne.s32.totalorder %s21_s25, %s390_s10  ;;  %p396_p5 = scmp.lt.s32.totalorder %s390_s10, %s390_s10 }
   0xc   :  { %p397_p6 = por %p396_p5, %p395_p4 }
   0xe   :  { %p398_p7 = pnand %p397_p6, %p391_p3 }
  0x10   :  { %401 = shalt.err (!%p398_p7)
}
  0x11   :  { %s453_s11 = smov 128   ;;  %s454_s12 = smov 8  }
  0x12   :  { %26 = dma.hbm_to_vmem [thread:$0]  %s558_s0, 256, %s21_s25, [#allocation4], %s453_s11, %s453_s11, %s454_s12  }
  0x13   :  { %s455_s15 = smov [#allocation6]   ;;  %s402_s19 = scalar_lea.hbm %s561_s3, 1024 }
  0x14   :  { %s36_s16 = sshll.u32 %s455_s15, 4  ;;  %p403_p8 = scmp.ne.s32.totalorder %s561_s3, %s402_s19  ;;  %s37_s16 = int_to_ptr.vmem [resolvable:$true] %s36_s16 }
  0x15   :  { %p406_p9 = scmp.lt.u32.totalorder %s402_s19, %s561_s3 }
  0x17   :  { %p408_p10 = pnand %p406_p9, %p403_p8 }
  0x19   :  { %411 = shalt.err (!%p408_p10)
}
  0x1a   :  { %s412_s24 = scalar_lea.vmem %s37_s16, 1024  ;;  %p417_p12 = scmp.lt.s32.totalorder %s37_s16, %s37_s16 }
  0x1b   :  { %p413_p11 = scmp.ne.s32.totalorder %s37_s16, %s412_s24  ;;  %p418_p13 = scmp.lt.s32.totalorder %s412_s24, %s412_s24 }
  0x1d   :  { %p419_p0 = por %p418_p13, %p417_p12 }
  0x1f   :  { %p420_p1 = pnand %p419_p0, %p413_p11 }
  0x21   :  { %423 = shalt.err (!%p420_p1)
}
  0x22   :  { %s456_s0 = smov 64   ;;  %s457_s25 = smov 4  }
  0x23   :  { %42 = dma.hbm_to_vmem [thread:$0]  %s561_s3, 1024, %s37_s16, [#allocation7], %s456_s0, %s456_s0, %s457_s25  }
  0x24   :  { %446 = dma.done.wait [#allocation4], 256  }
  0x25   :  { %447 = vsyncadd [#allocation4], 4294967040 }
  0x26   :  { %448 = dma.done.wait [#allocation7], 1024  }
  0x27   :  { %449 = vsyncadd [#allocation7], 4294966272  ;;  %v458_v0 = vmov 0.0   ;;  %vm459_vm0 = vmmov 0   ;;  %v371_v1 = vld [vmem:[%s559_s1] sm:$0xff]   ;;  %v57_v3 = vld [vmem:[#allocation3 + $0x8] sm:$0xff] }
  0x28   :  { %328 = vmatprep.subr.bf16.mxu0 %v458_v0  ;;  %330 = vmatprep.mubr.msk.bf16.mxu0 %vm459_vm0, %v458_v0  ;;  %v56_v2 = vld [vmem:[#allocation3] sm:$0xff]  ;;  %vm74_vm1 = vcmask 130048   ;;  %v372_v5 = vld [vmem:[#allocation6] sm:$0xff]   ;;  %v373_v6 = vld [vmem:[#allocation6 + $0x8] sm:$0xff]   ;;  %v460_v24 = vmov 0  }
  0x29   :  { %334 = vmatprep.subr.bf16.mxu1 %v458_v0  ;;  %350 = vmatprep.mubr.msk.bf16.mxu1 %vm459_vm0, %v458_v0  ;;  %v58_v4 = vpack.c.bf16 %v57_v3, %v56_v2  ;;  %v374_v7 = vld [vmem:[#allocation6 + $0x10] sm:$0xff]   ;;  %v375_v8 = vld [vmem:[#allocation6 + $0x18] sm:$0xff]   ;;  %v376_v9 = vld [vmem:[#allocation6 + $0x20] sm:$0xff]  }
  0x2a   :  { %329 = vmatpush3.bf16.msra.mxu0 %v371_v1  ;;  %335 = vmatpush3.bf16.msra.mxu1 %v372_v5  ;;  %v377_v10 = vld [vmem:[#allocation6 + $0x28] sm:$0xff]   ;;  %v378_v11 = vld [vmem:[#allocation6 + $0x30] sm:$0xff]   ;;  %v379_v12 = vld [vmem:[#allocation6 + $0x38] sm:$0xff]  }
  0x2b   :  { %354 = vmatprep.subr.bf16.mxu0 %v458_v0  ;;  %336 = vmatprep.subr.bf16.mxu1 %v458_v0  ;;  %v303_v13 = vld [vmem:[%s560_s2] ss:$0 sm:$0xff] }
  0x2c   :  { %v240_v23 = vld [vmem:[%s564_s6] sm:$0xff]  ;;  %370 = vset.pattern.permute.xlu0 %v460_v24  ;;  %s461_s6 = smov [#allocation8]  }
  0x2d   :  { %331 = vmatmul.mubr.msk.bf16.vlgmr.msra.gmra.mrb[0].mxu0 %vm74_vm1, %v58_v4  ;;  %243 = vperm.xlu0 %370, %v240_v23   ;;  %v306_v25 = vld [vmem:[%s562_s4] ss:$0 sm:$0xff]  ;;  %s293_s12 = sshll.u32 %s461_s6, 4  ;;  %s294_s12 = int_to_ptr.vmem [resolvable:$true] %s293_s12 }
  0x2e   :  { %356 = vmatprep.mubr.msk.bf16.mxu0 %vm459_vm0, %v458_v0  ;;  %337 = vmatpush3.bf16.msra.mxu1 %v373_v6  ;;  %v239_v35 = vld [vmem:[%s563_s5] sm:$0xf]  ;;  %s424_s4 = scalar_lea.vmem %s294_s12, 128  ;;  %p429_p3 = scmp.lt.s32.totalorder %s294_s12, %s294_s12 }
  0x2f   :  { %338 = vmatprep.subr.bf16.mxu1 %v458_v0  ;;  %p425_p2 = scmp.ne.s32.totalorder %s294_s12, %s424_s4  ;;  %p430_p4 = scmp.lt.s32.totalorder %s424_s4, %s424_s4 }
  0x31   :  { %p431_p5 = por %p430_p4, %p429_p3 }
  0x32   :  { %339 = vmatpush3.bf16.msra.mxu1 %v374_v7 }
  0x33   :  { %340 = vmatprep.subr.bf16.mxu1 %v458_v0  ;;  %p432_p6 = pnand %p431_p5, %p425_p2 }
  0x36   :  { %341 = vmatpush3.bf16.msra.mxu1 %v375_v8 }
  0x37   :  { %342 = vmatprep.subr.bf16.mxu1 %v458_v0 }
  0x3a   :  { %343 = vmatpush3.bf16.msra.mxu1 %v376_v9 }
  0x3b   :  { %344 = vmatprep.subr.bf16.mxu1 %v458_v0 }
  0x3e   :  { %345 = vmatpush3.bf16.msra.mxu1 %v377_v10 }
  0x3f   :  { %346 = vmatprep.subr.bf16.mxu1 %v458_v0 }
  0x42   :  { %347 = vmatpush3.bf16.msra.mxu1 %v378_v11 }
  0x43   :  { %348 = vmatprep.subr.bf16.mxu1 %v458_v0 }
  0x46   :  { %349 = vmatpush3.bf16.msra.mxu1 %v379_v12 }
  0xac   :  { %v244_v36 = vpop.permute.xlu0 %243 }
 0x100   :  { %v112_v14 = vpop.f32.mrb[0].mxu0 }
 0x101   :  { %v113_v15 = vadd.f32 %v303_v13, %v112_v14  ;;  %v332_v16 = vpop.f32.mrb[1].mxu0 }
 0x102   :  { %v115_v17 = vpop.f32.mrb[2].mxu0 }
 0x103   :  { %v116_v18 = vadd.f32 %v303_v13, %v115_v17  ;;  %v333_v19 = vpop.f32.mrb[3].mxu0  ;;  %v119_v20 = vmax.f32 %v113_v15, 0.0 }
 0x105   :  { %v120_v21 = vmax.f32 %v116_v18, 0.0 }
 0x107   :  { %v121_v22 = vpack.c.bf16 %v120_v21, %v119_v20 }
 0x109   :  { %351 = vmatmul.mubr.bf16.vlgmr.msra.gmra.mrb[0].mxu1 %v121_v22 }
 0x1dc   :  { %v229_v26 = vpop.f32.mrb[0].mxu1 }
 0x1dd   :  { %v230_v27 = vadd.f32 %v306_v25, %v229_v26  ;;  %v352_v28 = vpop.f32.mrb[1].mxu1 }
 0x1de   :  { %v232_v29 = vpop.f32.mrb[2].mxu1 }
 0x1df   :  { %v233_v30 = vadd.f32 %v306_v25, %v232_v29  ;;  %v353_v31 = vpop.f32.mrb[3].mxu1  ;;  %v236_v32 = vmax.f32 %v230_v27, 0.0 }
 0x1e1   :  { %v237_v33 = vmax.f32 %v233_v30, 0.0 }
 0x1e3   :  { %v238_v34 = vpack.c.bf16 %v237_v33, %v236_v32 }
 0x1e5   :  { %355 = vmatpush3.bf16.xpose.msra.mxu0 %v238_v34 }
 0x1ec   :  { %357 = vmatmul.mubr.bf16.vlgmr.msra.gmra.mrb[4].mxu0 %v239_v35 }
 0x2bf   :  { %v280_v37 = vpop.f32.mrb[4].mxu0 }
 0x2c0   :  { %v281_v38 = vadd.f32 %v280_v37, %v244_v36  ;;  %v358_v39 = vpop.f32.mrb[5].mxu0 }
 0x2c1   :  { %v283_v40 = vpop.f32.mrb[6].mxu0 }
 0x2c2   :  { %286 = vst.msk [vmem:[#allocation8] sm:$0xff] %vm74_vm1, %v281_v38  ;;  %v359_v41 = vpop.f32.mrb[7].mxu0 }
 0x2c3   :  { %435 = shalt.err (!%p432_p6)
}
 0x2c4   :  { %s436_s14 = scalar_lea.hbm %s565_s7, 128 }
 0x2c5   :  { %p437_p7 = scmp.ne.s32.totalorder %s565_s7, %s436_s14  ;;  %p440_p8 = scmp.lt.u32.totalorder %s436_s14, %s565_s7 }
 0x2c7   :  { %p442_p9 = pnand %p440_p8, %p437_p7 }
 0x2c9   :  { %445 = shalt.err (!%p442_p9)
}
 0x2ca   :  { %296 = dma.vmem_to_hbm [thread:$0]  %s294_s12, 128, %s565_s7, [#allocation5]  }
 0x2cb   :  { %450 = dma.done.wait [#allocation5], 128  }
 0x2cc   :  { %451 = vsyncadd [#allocation5], 4294967168 }
 0x2cd   :  { %300 = vsyncpa [#allocation4], 1 }
 0x2ce   :  { %301 = vsyncpa [#allocation7], 1 }
 0x2cf   :  { %302 = vsyncpa [#allocation5], 1 }

</bundles_post_ra>
